<compile_context>
chip_gen: v7x
topology: tpu7x:2x2x1
jax: 0.10.0
libtpu: 0.0.40
codegen_flags: <defaults>
</compile_context>

<pallas_src>
import math
import functools

import jax
import jax.numpy as jnp
from jax.experimental import pallas as pl
from jax.experimental.pallas import tpu as pltpu


def phi_net_kernel(x_ref, w1_ref, b1_ref, w2_ref, b2_ref, w3_ref, b3_ref, o_ref):
    # fc1 + relu  (MXU matmul with f32 accumulation; bias/ReLU on the VPU in f32)
    h1 = jnp.dot(x_ref[...], w1_ref[...], preferred_element_type=jnp.float32)
    h1 = jnp.maximum(h1 + b1_ref[...], 0.0)
    # fc2 + relu
    h2 = jnp.dot(h1, w2_ref[...], preferred_element_type=jnp.float32)
    h2 = jnp.maximum(h2 + b2_ref[...], 0.0)
    # mu (no activation); output columns are lane-padded to 128, so the store is dense.
    out = jnp.dot(h2, w3_ref[...], preferred_element_type=jnp.float32) + b3_ref[...]
    o_ref[...] = out.astype(o_ref.dtype)


def _round_up(x, m):
    return -(-x // m) * m


def _choose_tile_b(batch):
    """Batch tile: multiple of 8 (fp32 sublane), big enough to keep DMA tiles large,
    capped at 512 rows so double-buffered activation tiles easily fit VMEM on v7x."""
    if batch >= 512:
        return 512
    return max(8, _round_up(batch, 8))


@functools.partial(jax.jit, static_argnames=("tile_b", "vmem_limit_bytes"))
def phi_net_forward(x, params, *, tile_b=None, vmem_limit_bytes=32 * 1024 * 1024):
    """x: (B, state_dim) float32; params: (in,out)-layout weights and (1,out) biases."""
    w1, b1, w2, b2, w3, b3 = (
        params["w1"], params["b1"],
        params["w2"], params["b2"],
        params["w3"], params["b3"],
    )
    batch, state_dim = x.shape
    neu = w1.shape[1]
    output_dim = w3.shape[1]

    # Lane-dense output: pad the final projection's output columns to a 128 multiple.
    out_pad = _round_up(max(output_dim, 128), 128)
    if out_pad != output_dim:
        w3p = jnp.pad(w3, ((0, 0), (0, out_pad - output_dim)))
        b3p = jnp.pad(b3, ((0, 0), (0, out_pad - output_dim)))
    else:
        w3p, b3p = w3, b3

    if tile_b is None:
        tile_b = _choose_tile_b(batch)

    # Pad the batch to a TILE_B multiple so every grid step is a full, unmasked tile.
    batch_pad = _round_up(batch, tile_b)
    xp = jnp.pad(x, ((0, batch_pad - batch), (0, 0))) if batch_pad != batch else x
    grid = (batch_pad // tile_b,)

    const = lambda i: (0, 0)  # weights/biases: same block every step -> VMEM-resident

    out_padded = pl.pallas_call(
        phi_net_kernel,
        out_shape=jax.ShapeDtypeStruct((batch_pad, out_pad), jnp.float32),
        grid=grid,
        in_specs=[
            pl.BlockSpec((tile_b, state_dim), lambda i: (i, 0)),  # x streams over batch
            pl.BlockSpec((state_dim, neu), const),                # w1 (VMEM resident)
            pl.BlockSpec((1, neu), const),                        # b1
            pl.BlockSpec((neu, neu), const),                      # w2
            pl.BlockSpec((1, neu), const),                        # b2
            pl.BlockSpec((neu, out_pad), const),                  # w3 (lane-padded)
            pl.BlockSpec((1, out_pad), const),                    # b3 (lane-padded)
        ],
        out_specs=pl.BlockSpec((tile_b, out_pad), lambda i: (i, 0)),
        compiler_params=pltpu.CompilerParams(
            dimension_semantics=("parallel",),   # v7x: split batch tiles across 2 TCs
            vmem_limit_bytes=vmem_limit_bytes,   # explicit budget (v7x has 64 MiB)
        ),
    )(xp, w1, b1, w2, b2, w3p, b3p)

    # Slice away batch padding and lane padding to recover the true output.
    return out_padded[:batch, :output_dim]


def init_phi_net_params(key, state_dim, output_dim, neu_size):
    """Deterministic init mimicking torch.nn.Linear default: U(-1/sqrt(fan_in), +)."""
    keys = jax.random.split(key, 6)

    def linear_init(kw, kb, fan_in, fan_out):
        bound = 1.0 / math.sqrt(fan_in)
        w = jax.random.uniform(kw, (fan_in, fan_out), jnp.float32, -bound, bound)
        b = jax.random.uniform(kb, (1, fan_out), jnp.float32, -bound, bound)
        return w, b

    w1, b1 = linear_init(keys[0], keys[1], state_dim, neu_size)
    w2, b2 = linear_init(keys[2], keys[3], neu_size, neu_size)
    w3, b3 = linear_init(keys[4], keys[5], neu_size, output_dim)
    return {"w1": w1, "b1": b1, "w2": w2, "b2": b2, "w3": w3, "b3": b3}


def _reference(x, params):
    h1 = jnp.maximum(x @ params["w1"] + params["b1"], 0.0)
    h2 = jnp.maximum(h1 @ params["w2"] + params["b2"], 0.0)
    return h2 @ params["w3"] + params["b3"]


if __name__ == "__main__":
    state_dim = 16
    neu_size = 32
    output_dim = 4

    key = jax.random.PRNGKey(0)
    key_params, key_x1, key_x2 = jax.random.split(key, 3)
    params = init_phi_net_params(key_params, state_dim, output_dim, neu_size)

    # Test 1: small batch with an explicit tile (64 rows / tile_b=16 -> 4 grid steps,
    # weights resident across steps).
    batch = 64
    x = jax.random.normal(key_x1, (batch, state_dim), dtype=jnp.float32)
    out = jax.block_until_ready(phi_net_forward(x, params, tile_b=16))
    ref = _reference(x, params)
    assert out.shape == (batch, output_dim)
    assert jnp.allclose(out, ref, atol=1e-5, rtol=1e-5)

    # Test 2: ragged small batch (wrapper pads to a tile multiple and slices back).
    batch2 = 20
    x2 = jax.random.normal(key_x2, (batch2, state_dim), dtype=jnp.float32)
    out2 = jax.block_until_ready(phi_net_forward(x2, params))
    ref2 = _reference(x2, params)
    assert out2.shape == (batch2, output_dim)
    assert jnp.allclose(out2, ref2, atol=1e-5, rtol=1e-5)

    print("KERNEL_OK")
</pallas_src>

<mosaic_0001>
module attributes {stable_mosaic.version = 11 : i64} {
  func.func @phi_net_kernel(%arg0: i32, %arg1: memref<16x16xf32, #tpu.memory_space<vmem>>, %arg2: memref<16x32xf32, #tpu.memory_space<vmem>>, %arg3: memref<1x32xf32, #tpu.memory_space<vmem>>, %arg4: memref<32x32xf32, #tpu.memory_space<vmem>>, %arg5: memref<1x32xf32, #tpu.memory_space<vmem>>, %arg6: memref<32x128xf32, #tpu.memory_space<vmem>>, %arg7: memref<1x128xf32, #tpu.memory_space<vmem>>, %arg8: memref<16x128xf32, #tpu.memory_space<vmem>>) attributes {dimension_semantics = [#tpu.dimension_semantics<parallel>], iteration_bounds = array<i64: 4>, scalar_prefetch = 0 : i64, scratch_operands = 0 : i64, tpu.core_type = #tpu.core_type<tc>, window_params = [{transform_indices = @transform_0, window_bounds = array<i64: 16, 16>}, {pipeline_mode = #tpu.pipeline_mode<synchronous>, transform_indices = @transform_1, window_bounds = array<i64: 16, 32>}, {pipeline_mode = #tpu.pipeline_mode<synchronous>, transform_indices = @transform_2, window_bounds = array<i64: 1, 32>}, {pipeline_mode = #tpu.pipeline_mode<synchronous>, transform_indices = @transform_3, window_bounds = array<i64: 32, 32>}, {pipeline_mode = #tpu.pipeline_mode<synchronous>, transform_indices = @transform_4, window_bounds = array<i64: 1, 32>}, {pipeline_mode = #tpu.pipeline_mode<synchronous>, transform_indices = @transform_5, window_bounds = array<i64: 32, 128>}, {pipeline_mode = #tpu.pipeline_mode<synchronous>, transform_indices = @transform_6, window_bounds = array<i64: 1, 128>}, {transform_indices = @transform_7, window_bounds = array<i64: 16, 128>}]} {
    %c0 = arith.constant 0 : index
    %c0_0 = arith.constant 0 : index
    %0 = vector.load %arg1[%c0, %c0_0] : memref<16x16xf32, #tpu.memory_space<vmem>>, vector<16x16xf32>
    %c0_1 = arith.constant 0 : index
    %c0_2 = arith.constant 0 : index
    %1 = vector.load %arg2[%c0_1, %c0_2] : memref<16x32xf32, #tpu.memory_space<vmem>>, vector<16x32xf32>
    %cst = arith.constant dense<0.000000e+00> : vector<16x32xf32>
    %2 = tpu.matmul %0, %1, %cst {dimension_numbers = #tpu.dot_dimension_numbers<[1], [0], [0], [1], [0, 0, 1, 1], [], []>} : vector<16x16xf32>, vector<16x32xf32>, vector<16x32xf32> -> vector<16x32xf32>
    %c0_3 = arith.constant 0 : index
    %c0_4 = arith.constant 0 : index
    %3 = vector.load %arg3[%c0_3, %c0_4] : memref<1x32xf32, #tpu.memory_space<vmem>>, vector<1x32xf32>
    %4 = vector.broadcast %3 : vector<1x32xf32> to vector<16x32xf32>
    %5 = arith.addf %2, %4 : vector<16x32xf32>
    %cst_5 = arith.constant 0.000000e+00 : f32
    %6 = vector.broadcast %cst_5 : f32 to vector<16x32xf32>
    %7 = arith.maximumf %5, %6 : vector<16x32xf32>
    %c0_6 = arith.constant 0 : index
    %c0_7 = arith.constant 0 : index
    %8 = vector.load %arg4[%c0_6, %c0_7] : memref<32x32xf32, #tpu.memory_space<vmem>>, vector<32x32xf32>
    %cst_8 = arith.constant dense<0.000000e+00> : vector<16x32xf32>
    %9 = tpu.matmul %7, %8, %cst_8 {dimension_numbers = #tpu.dot_dimension_numbers<[1], [0], [0], [1], [0, 0, 1, 1], [], []>} : vector<16x32xf32>, vector<32x32xf32>, vector<16x32xf32> -> vector<16x32xf32>
    %c0_9 = arith.constant 0 : index
    %c0_10 = arith.constant 0 : index
    %10 = vector.load %arg5[%c0_9, %c0_10] : memref<1x32xf32, #tpu.memory_space<vmem>>, vector<1x32xf32>
    %11 = vector.broadcast %10 : vector<1x32xf32> to vector<16x32xf32>
    %12 = arith.addf %9, %11 : vector<16x32xf32>
    %cst_11 = arith.constant 0.000000e+00 : f32
    %13 = vector.broadcast %cst_11 : f32 to vector<16x32xf32>
    %14 = arith.maximumf %12, %13 : vector<16x32xf32>
    %c0_12 = arith.constant 0 : index
    %c0_13 = arith.constant 0 : index
    %15 = vector.load %arg6[%c0_12, %c0_13] : memref<32x128xf32, #tpu.memory_space<vmem>>, vector<32x128xf32>
    %cst_14 = arith.constant dense<0.000000e+00> : vector<16x128xf32>
    %16 = tpu.matmul %14, %15, %cst_14 {dimension_numbers = #tpu.dot_dimension_numbers<[1], [0], [0], [1], [0, 0, 1, 1], [], []>} : vector<16x32xf32>, vector<32x128xf32>, vector<16x128xf32> -> vector<16x128xf32>
    %c0_15 = arith.constant 0 : index
    %c0_16 = arith.constant 0 : index
    %17 = vector.load %arg7[%c0_15, %c0_16] : memref<1x128xf32, #tpu.memory_space<vmem>>, vector<1x128xf32>
    %18 = vector.broadcast %17 : vector<1x128xf32> to vector<16x128xf32>
    %19 = arith.addf %16, %18 : vector<16x128xf32>
    %c0_17 = arith.constant 0 : index
    %c0_18 = arith.constant 0 : index
    %20 = vector.load %arg8[%c0_17, %c0_18] : memref<16x128xf32, #tpu.memory_space<vmem>>, vector<16x128xf32>
    tpu.vector_store %arg8[%c0_17, %c0_18], %19 {strides = array<i32>} : memref<16x128xf32, #tpu.memory_space<vmem>>, vector<16x128xf32>,
    return
  }
  func.func @transform_0(%arg0: i32) -> (i32, i32) {
    %c0_i32 = arith.constant 0 : i32
    %c0_i32_0 = arith.constant 0 : i32
    return %arg0, %c0_i32 : i32, i32
  }
  func.func @transform_1(%arg0: i32) -> (i32, i32) {
    %c0_i32 = arith.constant 0 : i32
    %c0_i32_0 = arith.constant 0 : i32
    %c0_i32_1 = arith.constant 0 : i32
    return %c0_i32, %c0_i32_0 : i32, i32
  }
  func.func @transform_2(%arg0: i32) -> (i32, i32) {
    %c0_i32 = arith.constant 0 : i32
    %c0_i32_0 = arith.constant 0 : i32
    %c0_i32_1 = arith.constant 0 : i32
    return %c0_i32, %c0_i32_0 : i32, i32
  }
  func.func @transform_3(%arg0: i32) -> (i32, i32) {
    %c0_i32 = arith.constant 0 : i32
    %c0_i32_0 = arith.constant 0 : i32
    %c0_i32_1 = arith.constant 0 : i32
    return %c0_i32, %c0_i32_0 : i32, i32
  }
  func.func @transform_4(%arg0: i32) -> (i32, i32) {
    %c0_i32 = arith.constant 0 : i32
    %c0_i32_0 = arith.constant 0 : i32
    %c0_i32_1 = arith.constant 0 : i32
    return %c0_i32, %c0_i32_0 : i32, i32
  }
  func.func @transform_5(%arg0: i32) -> (i32, i32) {
    %c0_i32 = arith.constant 0 : i32
    %c0_i32_0 = arith.constant 0 : i32
    %c0_i32_1 = arith.constant 0 : i32
    return %c0_i32, %c0_i32_0 : i32, i32
  }
  func.func @transform_6(%arg0: i32) -> (i32, i32) {
    %c0_i32 = arith.constant 0 : i32
    %c0_i32_0 = arith.constant 0 : i32
    %c0_i32_1 = arith.constant 0 : i32
    return %c0_i32, %c0_i32_0 : i32, i32
  }
  func.func @transform_7(%arg0: i32) -> (i32, i32) {
    %c0_i32 = arith.constant 0 : i32
    %c0_i32_0 = arith.constant 0 : i32
    return %arg0, %c0_i32 : i32, i32
  }
}

</mosaic_0001>

<bundles_post_ra>
// kernel: phi_net_forward.1
= control target key start
LH: loop header
LB: loop body
LE: loop exit
PB: predicated region body
PF: predicated region fallthrough
CT: control target
= control target key end

     0   :  { %s763_s24 = smov 0   ;;  %s830_s0 = inlined_call_operand.vmem [shape: f32[64,16], index: 0, kind: input, shape index: {}]   ;;  %s831_s1 = inlined_call_operand.vmem [shape: f32[16,32], index: 1, kind: input, shape index: {}]   ;;  %s832_s2 = inlined_call_operand.vmem [shape: f32[1,32], index: 2, kind: input, shape index: {}]   ;;  %s833_s3 = inlined_call_operand.vmem [shape: f32[32,32], index: 3, kind: input, shape index: {}]   ;;  %s834_s4 = inlined_call_operand.vmem [shape: f32[1,32], index: 4, kind: input, shape index: {}]   ;;  %s835_s5 = inlined_call_operand.vmem [shape: f32[32,128], index: 5, kind: input, shape index: {}]   ;;  %s836_s6 = inlined_call_operand.vmem [shape: f32[1,128], index: 6, kind: input, shape index: {}]   ;;  %s837_s7 = inlined_call_operand.vmem [shape: f32[64,128], index: 7, kind: output, shape index: {}]  }
   0x1 LB: > { %s622_s25 = sadd.s32 4294967295, %s721_s24   ;;  %p626_p0 = scmp.ge.s32.totalorder %s721_s24, 1  ;;  %s721_s24 = sphi %s763_s24, %s17_s24  }
   0x2   : > { %p238_p1 = scmp.lt.s32.totalorder %s721_s24, 5 }
   0x4   : > { %p239_p2 = pnand %p626_p0, %p238_p1 }
   0x5   : > { %v284_v0 = vld [vmem:[%s831_s1] sm:$0xff] (!%p239_p2)  ;;  %v285_v1 = vld [vmem:[%s831_s1 + $0x8] sm:$0xff] (!%p239_p2)  ;;  %s627_s30 = sshll.u32 (!%p239_p2), %s622_s25, 1  ;;  %vm293_vm0 = vcmask (!%p239_p2), 130048   ;;  %v379_v8 = vld [vmem:[%s833_s3 + $0x10] sm:$0xff] (!%p239_p2)  ;;  %vm388_vm1 = vcmask (!%p239_p2), 261120  }
   0x6   : > { %242 = sbr.rel (%p239_p2) target bundleno = 670 (0x29e), region = 48  ;;  %v377_v2 = vld [vmem:[%s833_s3] sm:$0xff] (!%p239_p2)  ;;  %v687_v3 = vpack.c.bf16 (!%p239_p2), %v285_v1, %v284_v0  ;;  %p271_p3 = scmp.lt.s32.totalorder (!%p239_p2), %s627_s30, 7  ;;  %v378_v4 = vld [vmem:[%s833_s3 + $0x8] sm:$0xff] (!%p239_p2)  ;;  %v380_v9 = vld [vmem:[%s833_s3 + $0x18] sm:$0xff] (!%p239_p2) }
   0x7   : > { %v691_v5 = vpack.c.bf16 (!%p239_p2), %v378_v4, %v377_v2  ;;  %v695_v10 = vpack.c.bf16 (!%p239_p2), %v380_v9, %v379_v8  ;;  %v472_v11 = vld [vmem:[%s835_s5] sm:$0xff] (!%p239_p2)  ;;  %v473_v12 = vld [vmem:[%s835_s5 + $0x8] sm:$0xff] (!%p239_p2)  ;;  %v474_v21 = vld [vmem:[%s835_s5 + $0x10] sm:$0xff] (!%p239_p2) }
   0x8   : > { %688 = vmatprep.subr.bf16.mxu0 (!%p239_p2), %v687_v3  ;;  %v699_v13 = vpack.c.bf16 (!%p239_p2), %v473_v12, %v472_v11  ;;  %v631_v14 = vld [vmem:[%s832_s2] ss:$0 sm:$0xff] (!%p239_p2)  ;;  %v475_v22 = vld [vmem:[%s835_s5 + $0x18] sm:$0xff] (!%p239_p2) }
   0x9   : > { %690 = vmatpush3.bf16.msra.mxu0 (!%p239_p2), %v687_v3  ;;  %692 = vmatprep.subr.bf16.mxu1 (!%p239_p2), %v691_v5  ;;  %v703_v23 = vpack.c.bf16 (!%p239_p2), %v475_v22, %v474_v21  ;;  %v634_v24 = vld [vmem:[%s834_s4] ss:$0 sm:$0xff] (!%p239_p2) }
   0xa   : > { %694 = vmatpush3.bf16.msra.mxu1 (!%p239_p2), %v691_v5  ;;  %700 = vmatprep.subr.bf16.mxu0 (!%p239_p2), %v699_v13  ;;  %v637_v31 = vld [vmem:[%s836_s6] ss:$0 sm:$0xff] (!%p239_p2) }
   0xb   : > { %696 = vmatprep.subr.bf16.mxu1 (!%p239_p2), %v695_v10 }
   0xd   : > { %s839_s30 = smov (!%p271_p3, %s627_s30), 7 }
   0xe   : > { %s628_s12 = sshll.u32 %s839_s30, 3  ;;  %698 = vmatpush3.bf16.msra.mxu1 %v695_v10 }
   0xf   : > { %s274_s15 = scalar_lea.vmem %s830_s0, %s628_s12  ;;  %s280_s16 = scalar_lea.vmem %s837_s7, %s628_s12 }
  0x10   : > { %v282_v6 = vld [vmem:[%s274_s15] sm:$0xff]  ;;  %v283_v7 = vld [vmem:[%s274_s15 + $0x8] sm:$0xff] }
  0x11   : > { %662 = vmatprep.mubr.msk.f32.mxu0 %vm293_vm0, %v282_v6 }
  0x12   : > { %663 = vmatmul.mubr.msk.f32.vlgmr.msra.gmra.mrb[0].mxu0 %vm293_vm0, %v283_v7 }
  0x13   : > { %702 = vmatpush3.bf16.msra.mxu0 %v699_v13 }
  0x14   : > { %704 = vmatprep.subr.bf16.mxu0 %v703_v23 }
  0x17   : > { %706 = vmatpush3.bf16.msra.mxu0 %v703_v23 }
  0xe5   : > { %v664_v15 = vpop.f32.mrb[0].mxu0 }
  0xe6   : > { %v372_v16 = vadd.f32 %v664_v15, %v631_v14  ;;  %v366_v17 = vpop.f32.mrb[1].mxu0 }
  0xe7   : > { %v367_v18 = vadd.f32 %v631_v14, %v366_v17 }
  0xe8   : > { %v376_v20 = vmax.f32 %v372_v16, 0.0 }
  0xe9   : > { %v375_v19 = vmax.f32 %v367_v18, 0.0 }
  0xeb   : > { %673 = vmatprep.mubr.msk.f32.mxu1 %vm388_vm1, %v375_v19 }
  0xec   : > { %674 = vmatmul.mubr.msk.f32.vlgmr.msra.gmra.mrb[0].mxu1 %vm388_vm1, %v376_v20 }
 0x1bf   : > { %v675_v25 = vpop.f32.mrb[0].mxu1 }
 0x1c0   : > { %v467_v26 = vadd.f32 %v675_v25, %v634_v24  ;;  %v461_v27 = vpop.f32.mrb[1].mxu1 }
 0x1c1   : > { %v462_v28 = vadd.f32 %v634_v24, %v461_v27 }
 0x1c2   : > { %v471_v30 = vmax.f32 %v467_v26, 0.0 }
 0x1c3   : > { %v470_v29 = vmax.f32 %v462_v28, 0.0 }
 0x1c5   : > { %684 = vmatprep.mubr.msk.f32.mxu0 %vm388_vm1, %v470_v29 }
 0x1c6   : > { %685 = vmatmul.mubr.msk.f32.vlgmr.msra.gmra.mrb[2].mxu0 %vm388_vm1, %v471_v30 }
 0x299   : > { %v686_v32 = vpop.f32.mrb[2].mxu0 }
 0x29a   : > { %v555_v33 = vpop.f32.mrb[3].mxu0  ;;  %v561_v35 = vadd.f32 %v686_v32, %v637_v31 }
 0x29b   : > { %v556_v34 = vadd.f32 %v637_v31, %v555_v33 }
 0x29c   : > { %565 = vst [vmem:[%s280_s16 + $0x8] sm:$0xff] %v561_v35 }
 0x29d   : > { %564 = vst [vmem:[%s280_s16] sm:$0xff] %v556_v34 }
 0x29e PF: > { %s17_s24 = sadd.s32 1, %s721_s24  }
 0x29f   : > { %p14_p4 = scmp.ge.s32.totalorder %s17_s24, 6  }
 0x2a1   :  { %16 = sbr.rel (!%p14_p4) target bundleno = 1 (0x1), region = 78 }

</bundles_post_ra>
